<compile_context>
chip_gen: v7x
topology: tpu7x:2x2x1
jax: 0.10.0
libtpu: 0.0.40
codegen_flags: <defaults>
</compile_context>

<pallas_src>
import functools

import jax
import jax.numpy as jnp
from jax.experimental import pallas as pl
from jax.experimental.pallas import tpu as pltpu


def _round_up(x, m):
    return ((x + m - 1) // m) * m


def rnn_chunk_kernel(x_ref, whh_ref, h_ref, *, seq_len):
    """One grid step == (batch block, time chunk).

    x_ref  : (T_c, B_c, H_pad) bf16  pre-projected inputs (x_t @ Wih^T + b), time-major
    whh_ref: (H_pad, H_pad)    bf16  hidden->hidden weight (transposed), resident
    h_ref  : (B_c, H_pad)      f32   output block; constant index along the time
                                     axis -> VMEM-resident, doubles as the carry.
    """
    t_idx = pl.program_id(1)
    T_c = x_ref.shape[0]

    @pl.when(t_idx == 0)
    def _():
        h_ref[...] = jnp.zeros_like(h_ref)  # h0 = 0, as in the PyTorch module

    whh = whh_ref[...]  # bf16, fed straight to the MXU

    def run_steps(masked):
        # Statically-unrolled serial recurrence with per-step ref-indexed loads.
        h = h_ref[...]  # f32 carry
        for s in range(T_c):
            xp_s = x_ref[s].astype(jnp.float32)  # (B_c, H_pad)
            # bf16 operands / f32 accumulation on the MXU; VPU/EUP math in f32.
            h_new = jnp.tanh(
                xp_s
                + jnp.dot(h.astype(jnp.bfloat16), whh,
                          preferred_element_type=jnp.float32)
            )
            if masked:
                # Freeze h on padded timesteps (tail chunk only).
                h_new = jnp.where(t_idx * T_c + s < seq_len, h_new, h)
            h = h_new
        h_ref[...] = h

    if seq_len % T_c == 0:
        run_steps(masked=False)  # no padded timesteps anywhere
    else:
        last = pl.num_programs(1) - 1

        @pl.when(t_idx != last)
        def _():
            run_steps(masked=False)

        @pl.when(t_idx == last)
        def _():
            run_steps(masked=True)


def _choose_batch_block(B_pad, b_chunk):
    """Largest 16-aligned divisor of B_pad, <= b_chunk, giving >=2 blocks when
    the padded batch is large enough (shards over both TCs on v7x)."""
    if B_pad < 32:
        return B_pad
    target = min(b_chunk, B_pad // 2)
    c = target - (target % 16)
    while c >= 16:
        if B_pad % c == 0:
            return c
        c -= 16
    return B_pad


def _choose_time_chunk(T, B_c, H_pad, t_chunk, budget_bytes=20 << 20):
    """Fit (2 bf16 x-buffers + resident bf16 Whh + f32 h block) under a
    conservative VMEM budget that works on v5e/v6e/v7x default scoped limits."""
    fixed = H_pad * H_pad * 2 + 2 * B_c * H_pad * 4
    per_t = 2 * B_c * H_pad * 2
    avail = max(budget_bytes - fixed, per_t)
    return int(max(1, min(t_chunk, T, avail // per_t)))


def pallas_rnn_forward(x_tokens, params, *, t_chunk=64, b_chunk=256,
                       single_buffer_weights=True):
    """x_tokens: (B, T) int32 token ids. Returns (B, 1) float32 (as in PyTorch)."""
    emb = params["embedding"]  # (V, E)
    wih_t = params["wih_t"]    # (E, H)
    whh_t = params["whh_t"]    # (H, H)
    b = params["b"]            # (1, H)  (b_ih + b_hh)
    wfc_t = params["wfc_t"]    # (H, 1)
    bfc = params["bfc"]        # (1, 1)

    B, T = x_tokens.shape
    H = whh_t.shape[0]

    # Lane/sublane-aligned padded sizes (B -> 16 for bf16 sublane packing,
    # H -> 128 lanes). Zero padding is mathematically exact for the recurrence.
    B_pad = _round_up(B, 16)
    H_pad = _round_up(H, 128)

    B_c = _choose_batch_block(B_pad, b_chunk)
    T_c = _choose_time_chunk(T, B_c, H_pad, t_chunk)
    T_pad = _round_up(T, T_c)

    # Fold the input projection + bias into the embedding table once:
    #   emb_proj[tok] = emb[tok] @ Wih^T + (b_ih + b_hh)
    emb_proj = (emb @ wih_t + b).astype(jnp.bfloat16)  # (V, H)
    emb_proj = jnp.zeros((emb.shape[0], H_pad), jnp.bfloat16).at[:, :H].set(emb_proj)

    # Gather directly in time-major layout; only the tiny int32 token matrix is
    # transposed, never activations. Streamed in bf16 (half the HBM/DMA traffic).
    tok_tm = jnp.zeros((T_pad, B_pad), jnp.int32).at[:T, :B].set(x_tokens.T)
    x_tm = jnp.take(emb_proj, tok_tm, axis=0)  # (T_pad, B_pad, H_pad) bf16

    # hidden->hidden weight: bf16 operands, f32 accumulation in the kernel.
    whh_p = jnp.zeros((H_pad, H_pad), jnp.bfloat16).at[:H, :H].set(
        whh_t.astype(jnp.bfloat16))

    grid = (B_pad // B_c, T_pad // T_c)

    if single_buffer_weights:
        # Weight-stationary input: constant index_map -> double-buffering is waste.
        whh_spec = pl.BlockSpec((H_pad, H_pad), lambda bb, tt: (0, 0),
                                pipeline_mode=pl.Buffered(1))
    else:
        whh_spec = pl.BlockSpec((H_pad, H_pad), lambda bb, tt: (0, 0))

    # Explicit VMEM budget (>= default scoped limits, within v7x's 64 MiB part).
    x_bytes = 2 * T_c * B_c * H_pad * 2
    whh_bytes = (1 if single_buffer_weights else 2) * H_pad * H_pad * 2
    h_bytes = 2 * B_c * H_pad * 4
    vmem_limit = int(min(max(2 * (x_bytes + whh_bytes + h_bytes), 32 << 20), 64 << 20))

    h_last = pl.pallas_call(
        functools.partial(rnn_chunk_kernel, seq_len=T),
        out_shape=jax.ShapeDtypeStruct((B_pad, H_pad), jnp.float32),
        grid_spec=pltpu.PrefetchScalarGridSpec(
            num_scalar_prefetch=0,
            grid=grid,
            in_specs=[
                pl.BlockSpec((T_c, B_c, H_pad), lambda bb, tt: (tt, bb, 0)),
                whh_spec,
            ],
            out_specs=pl.BlockSpec((B_c, H_pad), lambda bb, tt: (bb, 0)),
        ),
        compiler_params=pltpu.CompilerParams(
            # batch axis parallel (shards over both TensorCores on v7x); the time
            # axis is the recurrence -> sequential ("arbitrary"), kept last.
            dimension_semantics=("parallel", "arbitrary"),
            vmem_limit_bytes=vmem_limit,
        ),
    )(x_tm, whh_p)

    # Final Linear(H, 1) + sigmoid epilogue in plain JAX on the real (B, H) slice
    # (a lane-width-1 Pallas output would only force masked stores).
    h_T = h_last[:B, :H]
    return jax.nn.sigmoid(h_T @ wfc_t + bfc)


def init_params(key, vocab_size, embedding_dim, hidden_dim):
    k = jax.random.split(key, 6)
    emb = jax.random.normal(k[0], (vocab_size, embedding_dim), jnp.float32) * 0.1
    # PyTorch stores weight_ih_l0: (H, E), weight_hh_l0: (H, H); keep transposed.
    wih = jax.random.normal(k[1], (hidden_dim, embedding_dim), jnp.float32) * 0.1
    whh = jax.random.normal(k[2], (hidden_dim, hidden_dim), jnp.float32) * 0.1
    b_ih = jax.random.normal(k[3], (hidden_dim,), jnp.float32) * 0.1
    b_hh = jax.random.normal(k[4], (hidden_dim,), jnp.float32) * 0.1
    wfc = jax.random.normal(k[5], (1, hidden_dim), jnp.float32) * 0.1
    bfc = jnp.zeros((1,), jnp.float32)
    return {
        "embedding": emb,
        "wih_t": wih.T,               # (E, H)
        "whh_t": whh.T,               # (H, H)
        "b": (b_ih + b_hh)[None, :],  # (1, H)
        "wfc_t": wfc.T,               # (H, 1)
        "bfc": bfc[None, :],          # (1, 1)
    }


def reference_forward(x_tokens, params):
    """Pure-JAX f32 reference mirroring the PyTorch module semantics."""
    emb = jnp.take(params["embedding"], x_tokens, axis=0)  # (B, T, E)
    B, T, _ = emb.shape
    H = params["whh_t"].shape[0]
    h = jnp.zeros((B, H), jnp.float32)
    for t in range(T):
        h = jnp.tanh(emb[:, t, :] @ params["wih_t"] + h @ params["whh_t"] + params["b"])
    return jax.nn.sigmoid(h @ params["wfc_t"] + params["bfc"])


if __name__ == "__main__":
    vocab_size, embedding_dim, hidden_dim = 32, 16, 32
    batch, seq = 2, 8

    key = jax.random.PRNGKey(0)
    kp, kx = jax.random.split(key)
    params = init_params(kp, vocab_size, embedding_dim, hidden_dim)
    x_tokens = jax.random.randint(kx, (batch, seq), 0, vocab_size, dtype=jnp.int32)

    ref = reference_forward(x_tokens, params)

    def run(**kw):
        fn = jax.jit(functools.partial(pallas_rnn_forward, **kw))
        return jax.block_until_ready(fn(x_tokens, params))

    single_buf = True
    try:
        out = run(single_buffer_weights=True)
    except Exception:
        # Fallback for JAX builds that reject pl.Buffered(1) on weight specs.
        single_buf = False
        out = run(single_buffer_weights=False)

    assert out.shape == (batch, 1), out.shape
    assert jnp.allclose(out, ref, atol=1e-2, rtol=1e-2), (out, ref)

    # Also exercise the padded-tail (masked last chunk) path: T=8 with T_c=3.
    out_tail = run(t_chunk=3, single_buffer_weights=single_buf)
    assert jnp.allclose(out_tail, ref, atol=1e-2, rtol=1e-2), (out_tail, ref)

    print("KERNEL_OK")
</pallas_src>

<mosaic_0001>
module attributes {stable_mosaic.version = 11 : i64} {
  func.func @rnn_chunk_kernel(%arg0: i32, %arg1: i32, %arg2: memref<8x16x128xbf16, #tpu.memory_space<vmem>>, %arg3: memref<128x128xbf16, #tpu.memory_space<vmem>>, %arg4: memref<16x128xf32, #tpu.memory_space<vmem>>) attributes {dimension_semantics = [#tpu.dimension_semantics<parallel>, #tpu.dimension_semantics<arbitrary>], iteration_bounds = array<i64: 1, 1>, scalar_prefetch = 0 : i64, scratch_operands = 0 : i64, tpu.core_type = #tpu.core_type<tc>, window_params = [{transform_indices = @transform_0, window_bounds = array<i64: 8, 16, 128>}, {pipeline_mode = #tpu.pipeline_mode<synchronous>, transform_indices = @transform_1, window_bounds = array<i64: 128, 128>}, {transform_indices = @transform_2, window_bounds = array<i64: 16, 128>}]} {
    %c0_i32 = arith.constant 0 : i32
    %0 = arith.cmpi eq, %arg1, %c0_i32 : i32
    %1 = arith.extui %0 : i1 to i32
    %c0_i32_0 = arith.constant 0 : i32
    %2 = arith.cmpi ne, %1, %c0_i32_0 : i32
    scf.if %2 {
      %cst_30 = arith.constant 0.000000e+00 : f32
      %62 = vector.broadcast %cst_30 : f32 to vector<16x128xf32>
      %c0_31 = arith.constant 0 : index
      %c0_32 = arith.constant 0 : index
      %63 = vector.load %arg4[%c0_31, %c0_32] : memref<16x128xf32, #tpu.memory_space<vmem>>, vector<16x128xf32>
      tpu.vector_store %arg4[%c0_31, %c0_32], %62 {strides = array<i32>} : memref<16x128xf32, #tpu.memory_space<vmem>>, vector<16x128xf32>,
    } else {
    }
    %c0 = arith.constant 0 : index
    %c0_1 = arith.constant 0 : index
    %3 = vector.load %arg3[%c0, %c0_1] : memref<128x128xbf16, #tpu.memory_space<vmem>>, vector<128x128xbf16>
    %c0_2 = arith.constant 0 : index
    %c0_3 = arith.constant 0 : index
    %4 = vector.load %arg4[%c0_2, %c0_3] : memref<16x128xf32, #tpu.memory_space<vmem>>, vector<16x128xf32>
    %c0_4 = arith.constant 0 : index
    %c0_5 = arith.constant 0 : index
    %c0_6 = arith.constant 0 : index
    %5 = vector.load %arg2[%c0_4, %c0_5, %c0_6] : memref<8x16x128xbf16, #tpu.memory_space<vmem>>, vector<1x16x128xbf16>
    %6 = vector.shape_cast %5 : vector<1x16x128xbf16> to vector<16x128xbf16>
    %7 = arith.extf %6 : vector<16x128xbf16> to vector<16x128xf32>
    %8 = arith.truncf %4 : vector<16x128xf32> to vector<16x128xbf16>
    %cst = arith.constant dense<0.000000e+00> : vector<16x128xf32>
    %9 = tpu.matmul %8, %3, %cst {dimension_numbers = #tpu.dot_dimension_numbers<[1], [0], [0], [1], [0, 0, 1, 1], [], []>} : vector<16x128xbf16>, vector<128x128xbf16>, vector<16x128xf32> -> vector<16x128xf32>
    %10 = arith.addf %7, %9 : vector<16x128xf32>
    %11 = math.tanh %10 : vector<16x128xf32>
    %c1 = arith.constant 1 : index
    %c0_7 = arith.constant 0 : index
    %c0_8 = arith.constant 0 : index
    %12 = vector.load %arg2[%c1, %c0_7, %c0_8] : memref<8x16x128xbf16, #tpu.memory_space<vmem>>, vector<1x16x128xbf16>
    %13 = vector.shape_cast %12 : vector<1x16x128xbf16> to vector<16x128xbf16>
    %14 = arith.extf %13 : vector<16x128xbf16> to vector<16x128xf32>
    %15 = arith.truncf %11 : vector<16x128xf32> to vector<16x128xbf16>
    %cst_9 = arith.constant dense<0.000000e+00> : vector<16x128xf32>
    %16 = tpu.matmul %15, %3, %cst_9 {dimension_numbers = #tpu.dot_dimension_numbers<[1], [0], [0], [1], [0, 0, 1, 1], [], []>} : vector<16x128xbf16>, vector<128x128xbf16>, vector<16x128xf32> -> vector<16x128xf32>
    %17 = arith.addf %14, %16 : vector<16x128xf32>
    %18 = math.tanh %17 : vector<16x128xf32>
    %c2 = arith.constant 2 : index
    %c0_10 = arith.constant 0 : index
    %c0_11 = arith.constant 0 : index
    %19 = vector.load %arg2[%c2, %c0_10, %c0_11] : memref<8x16x128xbf16, #tpu.memory_space<vmem>>, vector<1x16x128xbf16>
    %20 = vector.shape_cast %19 : vector<1x16x128xbf16> to vector<16x128xbf16>
    %21 = arith.extf %20 : vector<16x128xbf16> to vector<16x128xf32>
    %22 = arith.truncf %18 : vector<16x128xf32> to vector<16x128xbf16>
    %cst_12 = arith.constant dense<0.000000e+00> : vector<16x128xf32>
    %23 = tpu.matmul %22, %3, %cst_12 {dimension_numbers = #tpu.dot_dimension_numbers<[1], [0], [0], [1], [0, 0, 1, 1], [], []>} : vector<16x128xbf16>, vector<128x128xbf16>, vector<16x128xf32> -> vector<16x128xf32>
    %24 = arith.addf %21, %23 : vector<16x128xf32>
    %25 = math.tanh %24 : vector<16x128xf32>
    %c3 = arith.constant 3 : index
    %c0_13 = arith.constant 0 : index
    %c0_14 = arith.constant 0 : index
    %26 = vector.load %arg2[%c3, %c0_13, %c0_14] : memref<8x16x128xbf16, #tpu.memory_space<vmem>>, vector<1x16x128xbf16>
    %27 = vector.shape_cast %26 : vector<1x16x128xbf16> to vector<16x128xbf16>
    %28 = arith.extf %27 : vector<16x128xbf16> to vector<16x128xf32>
    %29 = arith.truncf %25 : vector<16x128xf32> to vector<16x128xbf16>
    %cst_15 = arith.constant dense<0.000000e+00> : vector<16x128xf32>
    %30 = tpu.matmul %29, %3, %cst_15 {dimension_numbers = #tpu.dot_dimension_numbers<[1], [0], [0], [1], [0, 0, 1, 1], [], []>} : vector<16x128xbf16>, vector<128x128xbf16>, vector<16x128xf32> -> vector<16x128xf32>
    %31 = arith.addf %28, %30 : vector<16x128xf32>
    %32 = math.tanh %31 : vector<16x128xf32>
    %c4 = arith.constant 4 : index
    %c0_16 = arith.constant 0 : index
    %c0_17 = arith.constant 0 : index
    %33 = vector.load %arg2[%c4, %c0_16, %c0_17] : memref<8x16x128xbf16, #tpu.memory_space<vmem>>, vector<1x16x128xbf16>
    %34 = vector.shape_cast %33 : vector<1x16x128xbf16> to vector<16x128xbf16>
    %35 = arith.extf %34 : vector<16x128xbf16> to vector<16x128xf32>
    %36 = arith.truncf %32 : vector<16x128xf32> to vector<16x128xbf16>
    %cst_18 = arith.constant dense<0.000000e+00> : vector<16x128xf32>
    %37 = tpu.matmul %36, %3, %cst_18 {dimension_numbers = #tpu.dot_dimension_numbers<[1], [0], [0], [1], [0, 0, 1, 1], [], []>} : vector<16x128xbf16>, vector<128x128xbf16>, vector<16x128xf32> -> vector<16x128xf32>
    %38 = arith.addf %35, %37 : vector<16x128xf32>
    %39 = math.tanh %38 : vector<16x128xf32>
    %c5 = arith.constant 5 : index
    %c0_19 = arith.constant 0 : index
    %c0_20 = arith.constant 0 : index
    %40 = vector.load %arg2[%c5, %c0_19, %c0_20] : memref<8x16x128xbf16, #tpu.memory_space<vmem>>, vector<1x16x128xbf16>
    %41 = vector.shape_cast %40 : vector<1x16x128xbf16> to vector<16x128xbf16>
    %42 = arith.extf %41 : vector<16x128xbf16> to vector<16x128xf32>
    %43 = arith.truncf %39 : vector<16x128xf32> to vector<16x128xbf16>
    %cst_21 = arith.constant dense<0.000000e+00> : vector<16x128xf32>
    %44 = tpu.matmul %43, %3, %cst_21 {dimension_numbers = #tpu.dot_dimension_numbers<[1], [0], [0], [1], [0, 0, 1, 1], [], []>} : vector<16x128xbf16>, vector<128x128xbf16>, vector<16x128xf32> -> vector<16x128xf32>
    %45 = arith.addf %42, %44 : vector<16x128xf32>
    %46 = math.tanh %45 : vector<16x128xf32>
    %c6 = arith.constant 6 : index
    %c0_22 = arith.constant 0 : index
    %c0_23 = arith.constant 0 : index
    %47 = vector.load %arg2[%c6, %c0_22, %c0_23] : memref<8x16x128xbf16, #tpu.memory_space<vmem>>, vector<1x16x128xbf16>
    %48 = vector.shape_cast %47 : vector<1x16x128xbf16> to vector<16x128xbf16>
    %49 = arith.extf %48 : vector<16x128xbf16> to vector<16x128xf32>
    %50 = arith.truncf %46 : vector<16x128xf32> to vector<16x128xbf16>
    %cst_24 = arith.constant dense<0.000000e+00> : vector<16x128xf32>
    %51 = tpu.matmul %50, %3, %cst_24 {dimension_numbers = #tpu.dot_dimension_numbers<[1], [0], [0], [1], [0, 0, 1, 1], [], []>} : vector<16x128xbf16>, vector<128x128xbf16>, vector<16x128xf32> -> vector<16x128xf32>
    %52 = arith.addf %49, %51 : vector<16x128xf32>
    %53 = math.tanh %52 : vector<16x128xf32>
    %c7 = arith.constant 7 : index
    %c0_25 = arith.constant 0 : index
    %c0_26 = arith.constant 0 : index
    %54 = vector.load %arg2[%c7, %c0_25, %c0_26] : memref<8x16x128xbf16, #tpu.memory_space<vmem>>, vector<1x16x128xbf16>
    %55 = vector.shape_cast %54 : vector<1x16x128xbf16> to vector<16x128xbf16>
    %56 = arith.extf %55 : vector<16x128xbf16> to vector<16x128xf32>
    %57 = arith.truncf %53 : vector<16x128xf32> to vector<16x128xbf16>
    %cst_27 = arith.constant dense<0.000000e+00> : vector<16x128xf32>
    %58 = tpu.matmul %57, %3, %cst_27 {dimension_numbers = #tpu.dot_dimension_numbers<[1], [0], [0], [1], [0, 0, 1, 1], [], []>} : vector<16x128xbf16>, vector<128x128xbf16>, vector<16x128xf32> -> vector<16x128xf32>
    %59 = arith.addf %56, %58 : vector<16x128xf32>
    %60 = math.tanh %59 : vector<16x128xf32>
    %c0_28 = arith.constant 0 : index
    %c0_29 = arith.constant 0 : index
    %61 = vector.load %arg4[%c0_28, %c0_29] : memref<16x128xf32, #tpu.memory_space<vmem>>, vector<16x128xf32>
    tpu.vector_store %arg4[%c0_28, %c0_29], %60 {strides = array<i32>} : memref<16x128xf32, #tpu.memory_space<vmem>>, vector<16x128xf32>,
    return
  }
  func.func @transform_0(%arg0: i32, %arg1: i32) -> (i32, i32, i32) {
    %c0_i32 = arith.constant 0 : i32
    %c0_i32_0 = arith.constant 0 : i32
    return %arg1, %arg0, %c0_i32 : i32, i32, i32
  }
  func.func @transform_1(%arg0: i32, %arg1: i32) -> (i32, i32) {
    %c0_i32 = arith.constant 0 : i32
    %c0_i32_0 = arith.constant 0 : i32
    %c0_i32_1 = arith.constant 0 : i32
    return %c0_i32, %c0_i32_0 : i32, i32
  }
  func.func @transform_2(%arg0: i32, %arg1: i32) -> (i32, i32) {
    %c0_i32 = arith.constant 0 : i32
    %c0_i32_0 = arith.constant 0 : i32
    return %arg0, %c0_i32 : i32, i32
  }
}

module attributes {stable_mosaic.version = 11 : i64} {
  func.func @rnn_chunk_kernel(%arg0: i32, %arg1: i32, %arg2: memref<8x16x128xbf16, #tpu.memory_space<vmem>>, %arg3: memref<128x128xbf16, #tpu.memory_space<vmem>>, %arg4: memref<16x128xf32, #tpu.memory_space<vmem>>) attributes {dimension_semantics = [#tpu.dimension_semantics<parallel>, #tpu.dimension_semantics<arbitrary>], iteration_bounds = array<i64: 1, 1>, scalar_prefetch = 0 : i64, scratch_operands = 0 : i64, tpu.core_type = #tpu.core_type<tc>, window_params = [{transform_indices = @transform_0, window_bounds = array<i64: 8, 16, 128>}, {pipeline_mode = #tpu.pipeline_mode<synchronous>, transform_indices = @transform_1, window_bounds = array<i64: 128, 128>}, {transform_indices = @transform_2, window_bounds = array<i64: 16, 128>}]} {
    %c0_i32 = arith.constant 0 : i32
    %0 = arith.cmpi eq, %arg1, %c0_i32 : i32
    %1 = arith.extui %0 : i1 to i32
    %c0_i32_0 = arith.constant 0 : i32
    %2 = arith.cmpi ne, %1, %c0_i32_0 : i32
    scf.if %2 {
      %cst_30 = arith.constant 0.000000e+00 : f32
      %62 = vector.broadcast %cst_30 : f32 to vector<16x128xf32>
      %c0_31 = arith.constant 0 : index
      %c0_32 = arith.constant 0 : index
      %63 = vector.load %arg4[%c0_31, %c0_32] : memref<16x128xf32, #tpu.memory_space<vmem>>, vector<16x128xf32>
      tpu.vector_store %arg4[%c0_31, %c0_32], %62 {strides = array<i32>} : memref<16x128xf32, #tpu.memory_space<vmem>>, vector<16x128xf32>,
    } else {
    }
    %c0 = arith.constant 0 : index
    %c0_1 = arith.constant 0 : index
    %3 = vector.load %arg3[%c0, %c0_1] : memref<128x128xbf16, #tpu.memory_space<vmem>>, vector<128x128xbf16>
    %c0_2 = arith.constant 0 : index
    %c0_3 = arith.constant 0 : index
    %4 = vector.load %arg4[%c0_2, %c0_3] : memref<16x128xf32, #tpu.memory_space<vmem>>, vector<16x128xf32>
    %c0_4 = arith.constant 0 : index
    %c0_5 = arith.constant 0 : index
    %c0_6 = arith.constant 0 : index
    %5 = vector.load %arg2[%c0_4, %c0_5, %c0_6] : memref<8x16x128xbf16, #tpu.memory_space<vmem>>, vector<1x16x128xbf16>
    %6 = vector.shape_cast %5 : vector<1x16x128xbf16> to vector<16x128xbf16>
    %7 = arith.extf %6 : vector<16x128xbf16> to vector<16x128xf32>
    %8 = arith.truncf %4 : vector<16x128xf32> to vector<16x128xbf16>
    %cst = arith.constant dense<0.000000e+00> : vector<16x128xf32>
    %9 = tpu.matmul %8, %3, %cst {dimension_numbers = #tpu.dot_dimension_numbers<[1], [0], [0], [1], [0, 0, 1, 1], [], []>} : vector<16x128xbf16>, vector<128x128xbf16>, vector<16x128xf32> -> vector<16x128xf32>
    %10 = arith.addf %7, %9 : vector<16x128xf32>
    %11 = math.tanh %10 : vector<16x128xf32>
    %c1 = arith.constant 1 : index
    %c0_7 = arith.constant 0 : index
    %c0_8 = arith.constant 0 : index
    %12 = vector.load %arg2[%c1, %c0_7, %c0_8] : memref<8x16x128xbf16, #tpu.memory_space<vmem>>, vector<1x16x128xbf16>
    %13 = vector.shape_cast %12 : vector<1x16x128xbf16> to vector<16x128xbf16>
    %14 = arith.extf %13 : vector<16x128xbf16> to vector<16x128xf32>
    %15 = arith.truncf %11 : vector<16x128xf32> to vector<16x128xbf16>
    %cst_9 = arith.constant dense<0.000000e+00> : vector<16x128xf32>
    %16 = tpu.matmul %15, %3, %cst_9 {dimension_numbers = #tpu.dot_dimension_numbers<[1], [0], [0], [1], [0, 0, 1, 1], [], []>} : vector<16x128xbf16>, vector<128x128xbf16>, vector<16x128xf32> -> vector<16x128xf32>
    %17 = arith.addf %14, %16 : vector<16x128xf32>
    %18 = math.tanh %17 : vector<16x128xf32>
    %c2 = arith.constant 2 : index
    %c0_10 = arith.constant 0 : index
    %c0_11 = arith.constant 0 : index
    %19 = vector.load %arg2[%c2, %c0_10, %c0_11] : memref<8x16x128xbf16, #tpu.memory_space<vmem>>, vector<1x16x128xbf16>
    %20 = vector.shape_cast %19 : vector<1x16x128xbf16> to vector<16x128xbf16>
    %21 = arith.extf %20 : vector<16x128xbf16> to vector<16x128xf32>
    %22 = arith.truncf %18 : vector<16x128xf32> to vector<16x128xbf16>
    %cst_12 = arith.constant dense<0.000000e+00> : vector<16x128xf32>
    %23 = tpu.matmul %22, %3, %cst_12 {dimension_numbers = #tpu.dot_dimension_numbers<[1], [0], [0], [1], [0, 0, 1, 1], [], []>} : vector<16x128xbf16>, vector<128x128xbf16>, vector<16x128xf32> -> vector<16x128xf32>
    %24 = arith.addf %21, %23 : vector<16x128xf32>
    %25 = math.tanh %24 : vector<16x128xf32>
    %c3 = arith.constant 3 : index
    %c0_13 = arith.constant 0 : index
    %c0_14 = arith.constant 0 : index
    %26 = vector.load %arg2[%c3, %c0_13, %c0_14] : memref<8x16x128xbf16, #tpu.memory_space<vmem>>, vector<1x16x128xbf16>
    %27 = vector.shape_cast %26 : vector<1x16x128xbf16> to vector<16x128xbf16>
    %28 = arith.extf %27 : vector<16x128xbf16> to vector<16x128xf32>
    %29 = arith.truncf %25 : vector<16x128xf32> to vector<16x128xbf16>
    %cst_15 = arith.constant dense<0.000000e+00> : vector<16x128xf32>
    %30 = tpu.matmul %29, %3, %cst_15 {dimension_numbers = #tpu.dot_dimension_numbers<[1], [0], [0], [1], [0, 0, 1, 1], [], []>} : vector<16x128xbf16>, vector<128x128xbf16>, vector<16x128xf32> -> vector<16x128xf32>
    %31 = arith.addf %28, %30 : vector<16x128xf32>
    %32 = math.tanh %31 : vector<16x128xf32>
    %c4 = arith.constant 4 : index
    %c0_16 = arith.constant 0 : index
    %c0_17 = arith.constant 0 : index
    %33 = vector.load %arg2[%c4, %c0_16, %c0_17] : memref<8x16x128xbf16, #tpu.memory_space<vmem>>, vector<1x16x128xbf16>
    %34 = vector.shape_cast %33 : vector<1x16x128xbf16> to vector<16x128xbf16>
    %35 = arith.extf %34 : vector<16x128xbf16> to vector<16x128xf32>
    %36 = arith.truncf %32 : vector<16x128xf32> to vector<16x128xbf16>
    %cst_18 = arith.constant dense<0.000000e+00> : vector<16x128xf32>
    %37 = tpu.matmul %36, %3, %cst_18 {dimension_numbers = #tpu.dot_dimension_numbers<[1], [0], [0], [1], [0, 0, 1, 1], [], []>} : vector<16x128xbf16>, vector<128x128xbf16>, vector<16x128xf32> -> vector<16x128xf32>
    %38 = arith.addf %35, %37 : vector<16x128xf32>
    %39 = math.tanh %38 : vector<16x128xf32>
    %c5 = arith.constant 5 : index
    %c0_19 = arith.constant 0 : index
    %c0_20 = arith.constant 0 : index
    %40 = vector.load %arg2[%c5, %c0_19, %c0_20] : memref<8x16x128xbf16, #tpu.memory_space<vmem>>, vector<1x16x128xbf16>
    %41 = vector.shape_cast %40 : vector<1x16x128xbf16> to vector<16x128xbf16>
    %42 = arith.extf %41 : vector<16x128xbf16> to vector<16x128xf32>
    %43 = arith.truncf %39 : vector<16x128xf32> to vector<16x128xbf16>
    %cst_21 = arith.constant dense<0.000000e+00> : vector<16x128xf32>
    %44 = tpu.matmul %43, %3, %cst_21 {dimension_numbers = #tpu.dot_dimension_numbers<[1], [0], [0], [1], [0, 0, 1, 1], [], []>} : vector<16x128xbf16>, vector<128x128xbf16>, vector<16x128xf32> -> vector<16x128xf32>
    %45 = arith.addf %42, %44 : vector<16x128xf32>
    %46 = math.tanh %45 : vector<16x128xf32>
    %c6 = arith.constant 6 : index
    %c0_22 = arith.constant 0 : index
    %c0_23 = arith.constant 0 : index
    %47 = vector.load %arg2[%c6, %c0_22, %c0_23] : memref<8x16x128xbf16, #tpu.memory_space<vmem>>, vector<1x16x128xbf16>
    %48 = vector.shape_cast %47 : vector<1x16x128xbf16> to vector<16x128xbf16>
    %49 = arith.extf %48 : vector<16x128xbf16> to vector<16x128xf32>
    %50 = arith.truncf %46 : vector<16x128xf32> to vector<16x128xbf16>
    %cst_24 = arith.constant dense<0.000000e+00> : vector<16x128xf32>
    %51 = tpu.matmul %50, %3, %cst_24 {dimension_numbers = #tpu.dot_dimension_numbers<[1], [0], [0], [1], [0, 0, 1, 1], [], []>} : vector<16x128xbf16>, vector<128x128xbf16>, vector<16x128xf32> -> vector<16x128xf32>
    %52 = arith.addf %49, %51 : vector<16x128xf32>
    %53 = math.tanh %52 : vector<16x128xf32>
    %c7 = arith.constant 7 : index
    %c0_25 = arith.constant 0 : index
    %c0_26 = arith.constant 0 : index
    %54 = vector.load %arg2[%c7, %c0_25, %c0_26] : memref<8x16x128xbf16, #tpu.memory_space<vmem>>, vector<1x16x128xbf16>
    %55 = vector.shape_cast %54 : vector<1x16x128xbf16> to vector<16x128xbf16>
    %56 = arith.extf %55 : vector<16x128xbf16> to vector<16x128xf32>
    %57 = arith.truncf %53 : vector<16x128xf32> to vector<16x128xbf16>
    %cst_27 = arith.constant dense<0.000000e+00> : vector<16x128xf32>
    %58 = tpu.matmul %57, %3, %cst_27 {dimension_numbers = #tpu.dot_dimension_numbers<[1], [0], [0], [1], [0, 0, 1, 1], [], []>} : vector<16x128xbf16>, vector<128x128xbf16>, vector<16x128xf32> -> vector<16x128xf32>
    %59 = arith.addf %56, %58 : vector<16x128xf32>
    %60 = math.tanh %59 : vector<16x128xf32>
    %c0_28 = arith.constant 0 : index
    %c0_29 = arith.constant 0 : index
    %61 = vector.load %arg4[%c0_28, %c0_29] : memref<16x128xf32, #tpu.memory_space<vmem>>, vector<16x128xf32>
    tpu.vector_store %arg4[%c0_28, %c0_29], %60 {strides = array<i32>} : memref<16x128xf32, #tpu.memory_space<vmem>>, vector<16x128xf32>,
    return
  }
  func.func @transform_0(%arg0: i32, %arg1: i32) -> (i32, i32, i32) {
    %c0_i32 = arith.constant 0 : i32
    %c0_i32_0 = arith.constant 0 : i32
    return %arg1, %arg0, %c0_i32 : i32, i32, i32
  }
  func.func @transform_1(%arg0: i32, %arg1: i32) -> (i32, i32) {
    %c0_i32 = arith.constant 0 : i32
    %c0_i32_0 = arith.constant 0 : i32
    %c0_i32_1 = arith.constant 0 : i32
    return %c0_i32, %c0_i32_0 : i32, i32
  }
  func.func @transform_2(%arg0: i32, %arg1: i32) -> (i32, i32) {
    %c0_i32 = arith.constant 0 : i32
    %c0_i32_0 = arith.constant 0 : i32
    return %arg0, %c0_i32 : i32, i32
  }
}

</mosaic_0001>

<bundles_post_ra>
// kernel: pallas_rnn_forward.1
= control target key start
LH: loop header
LB: loop body
LE: loop exit
PB: predicated region body
PF: predicated region fallthrough
CT: control target
= control target key end

     0   :  { %v832_v0 = vmov 0.0   ;;  %vm833_vm0 = vmmov 0   ;;  %v834_v9 = vmov 0.0|0.0   ;;  %s1064_s1 = inlined_call_operand.vmem [shape: bf16[128,128], index: 1, kind: input, shape index: {}]   ;;  %s1065_s0 = inlined_call_operand.vmem [shape: bf16[8,16,128], index: 0, kind: input, shape index: {}]   ;;  %s1066_s2 = inlined_call_operand.vmem [shape: f32[16,128], index: 2, kind: output, shape index: {}]  }
   0x1   :  { %630 = vmatprep.subr.bf16.mxu0 %v832_v0  ;;  %v854_v1 = vld [vmem:[%s1064_s1] sm:$0xff]   ;;  %646 = vmatprep.mubr.msk.bf16.mxu0 %vm833_vm0, %v832_v0  ;;  %v865_v2 = vld [vmem:[%s1064_s1 + $0x8] sm:$0xff]   ;;  %v874_v3 = vld [vmem:[%s1064_s1 + $0x10] sm:$0xff]  }
   0x2   :  { %650 = vmatprep.subr.bf16.mxu1 %v832_v0  ;;  %666 = vmatprep.mubr.msk.bf16.mxu1 %vm833_vm0, %v832_v0  ;;  %v883_v4 = vld [vmem:[%s1064_s1 + $0x18] sm:$0xff]   ;;  %v892_v5 = vld [vmem:[%s1064_s1 + $0x20] sm:$0xff]   ;;  %v901_v6 = vld [vmem:[%s1064_s1 + $0x28] sm:$0xff]  }
   0x3   :  { %631 = vmatpush3.bf16.msra.mxu0 %v854_v1  ;;  %651 = vmatpush3.bf16.msra.mxu1 %v854_v1  ;;  %v910_v7 = vld [vmem:[%s1064_s1 + $0x30] sm:$0xff]   ;;  %v919_v8 = vld [vmem:[%s1064_s1 + $0x38] sm:$0xff]   ;;  %v520_v10 = vld [vmem:[%s1065_s0] sm:$0xff]  }
   0x4   :  { %632 = vmatprep.subr.bf16.mxu0 %v832_v0  ;;  %652 = vmatprep.subr.bf16.mxu1 %v832_v0  ;;  %v521_v11 = vunpack.c.l.bf16 %v520_v10  ;;  %v522_v12 = vunpack.c.h.bf16 %v520_v10  ;;  %v551_v22 = vld [vmem:[%s1065_s0 + $0x8] sm:$0xff]   ;;  %v552_v34 = vld [vmem:[%s1065_s0 + $0x10] sm:$0xff]   ;;  %v553_v46 = vld [vmem:[%s1065_s0 + $0x18] sm:$0xff]  }
   0x5   :  { %v525_v23 = vunpack.c.l.bf16 %v551_v22  ;;  %v526_v24 = vunpack.c.h.bf16 %v551_v22  ;;  %v529_v35 = vunpack.c.l.bf16 %v552_v34  ;;  %v530_v36 = vunpack.c.h.bf16 %v552_v34  ;;  %v554_v58 = vld [vmem:[%s1065_s0 + $0x20] sm:$0xff]  }
   0x6   :  { %v533_v47 = vunpack.c.l.bf16 %v553_v46  ;;  %v534_v48 = vunpack.c.h.bf16 %v553_v46  ;;  %v537_v59 = vunpack.c.l.bf16 %v554_v58  ;;  %v538_v60 = vunpack.c.h.bf16 %v554_v58 }
   0x7   :  { %633 = vmatpush3.bf16.msra.mxu0 %v865_v2  ;;  %653 = vmatpush3.bf16.msra.mxu1 %v865_v2 }
   0x8   :  { %634 = vmatprep.subr.bf16.mxu0 %v832_v0  ;;  %654 = vmatprep.subr.bf16.mxu1 %v832_v0 }
   0xb   :  { %635 = vmatpush3.bf16.msra.mxu0 %v874_v3  ;;  %655 = vmatpush3.bf16.msra.mxu1 %v874_v3 }
   0xc   :  { %636 = vmatprep.subr.bf16.mxu0 %v832_v0  ;;  %656 = vmatprep.subr.bf16.mxu1 %v832_v0 }
   0xf   :  { %637 = vmatpush3.bf16.msra.mxu0 %v883_v4  ;;  %657 = vmatpush3.bf16.msra.mxu1 %v883_v4 }
  0x10   :  { %638 = vmatprep.subr.bf16.mxu0 %v832_v0  ;;  %658 = vmatprep.subr.bf16.mxu1 %v832_v0 }
  0x13   :  { %639 = vmatpush3.bf16.msra.mxu0 %v892_v5  ;;  %659 = vmatpush3.bf16.msra.mxu1 %v892_v5 }
  0x14   :  { %640 = vmatprep.subr.bf16.mxu0 %v832_v0  ;;  %660 = vmatprep.subr.bf16.mxu1 %v832_v0 }
  0x17   :  { %641 = vmatpush3.bf16.msra.mxu0 %v901_v6  ;;  %661 = vmatpush3.bf16.msra.mxu1 %v901_v6 }
  0x18   :  { %642 = vmatprep.subr.bf16.mxu0 %v832_v0  ;;  %662 = vmatprep.subr.bf16.mxu1 %v832_v0 }
  0x1b   :  { %643 = vmatpush3.bf16.msra.mxu0 %v910_v7  ;;  %663 = vmatpush3.bf16.msra.mxu1 %v910_v7 }
  0x1c   :  { %644 = vmatprep.subr.bf16.mxu0 %v832_v0  ;;  %664 = vmatprep.subr.bf16.mxu1 %v832_v0 }
  0x1f   :  { %645 = vmatpush3.bf16.msra.mxu0 %v919_v8  ;;  %665 = vmatpush3.bf16.msra.mxu1 %v919_v8 }
  0x20   :  { %670 = vmatprep.subr.bf16.mxu0 %v832_v0  ;;  %690 = vmatprep.subr.bf16.mxu1 %v832_v0 }
  0x22   :  { %647 = vmatmul.mubr.bf16.vlgmr.msra.gmra.mrb[0].mxu0 %v834_v9 }
  0x23   :  { %671 = vmatpush3.bf16.msra.mxu0 %v854_v1  ;;  %686 = vmatprep.mubr.msk.bf16.mxu0 %vm833_vm0, %v832_v0 }
  0x24   :  { %672 = vmatprep.subr.bf16.mxu0 %v832_v0 }
  0x27   :  { %673 = vmatpush3.bf16.msra.mxu0 %v865_v2 }
  0x28   :  { %674 = vmatprep.subr.bf16.mxu0 %v832_v0 }
  0x2b   :  { %675 = vmatpush3.bf16.msra.mxu0 %v874_v3 }
  0x2c   :  { %676 = vmatprep.subr.bf16.mxu0 %v832_v0 }
  0x2f   :  { %677 = vmatpush3.bf16.msra.mxu0 %v883_v4 }
  0x30   :  { %678 = vmatprep.subr.bf16.mxu0 %v832_v0 }
  0x33   :  { %679 = vmatpush3.bf16.msra.mxu0 %v892_v5 }
  0x34   :  { %680 = vmatprep.subr.bf16.mxu0 %v832_v0 }
  0x37   :  { %681 = vmatpush3.bf16.msra.mxu0 %v901_v6 }
  0x38   :  { %682 = vmatprep.subr.bf16.mxu0 %v832_v0 }
  0x3b   :  { %683 = vmatpush3.bf16.msra.mxu0 %v910_v7 }
  0x3c   :  { %684 = vmatprep.subr.bf16.mxu0 %v832_v0 }
  0x3f   :  { %685 = vmatpush3.bf16.msra.mxu0 %v919_v8 }
  0x40   :  { %710 = vmatprep.subr.bf16.mxu0 %v832_v0 }
  0xf5   :  { %v123_v13 = vpop.f32.mrb[0].mxu0 }
  0xf6   :  { %v130_v14 = vadd.f32 %v521_v11, %v123_v13  ;;  %v648_v15 = vpop.f32.mrb[1].mxu0 }
  0xf7   :  { %v126_v16 = vpop.f32.mrb[2].mxu0 }
  0xf8   :  { %v131_v17 = vadd.f32 %v522_v12, %v126_v16  ;;  %v649_v18 = vpop.f32.mrb[3].mxu0  ;;  %800 = vtanh.f32 %v130_v14 }
  0xfa   :  { %802 = vtanh.f32 %v131_v17 }
 0x102   :  { %v801_v19 = vpop.eup %800 }
 0x104   :  { %v803_v20 = vpop.eup %802 }
 0x105   :  { %v139_v21 = vpack.c.bf16 %v803_v20, %v801_v19 }
 0x107   :  { %667 = vmatmul.mubr.bf16.vlgmr.msra.gmra.mrb[0].mxu1 %v139_v21 }
 0x108   :  { %691 = vmatpush3.bf16.msra.mxu1 %v854_v1  ;;  %706 = vmatprep.mubr.msk.bf16.mxu1 %vm833_vm0, %v832_v0 }
 0x109   :  { %692 = vmatprep.subr.bf16.mxu1 %v832_v0 }
 0x10c   :  { %693 = vmatpush3.bf16.msra.mxu1 %v865_v2 }
 0x10d   :  { %694 = vmatprep.subr.bf16.mxu1 %v832_v0 }
 0x110   :  { %695 = vmatpush3.bf16.msra.mxu1 %v874_v3 }
 0x111   :  { %696 = vmatprep.subr.bf16.mxu1 %v832_v0 }
 0x114   :  { %697 = vmatpush3.bf16.msra.mxu1 %v883_v4 }
 0x115   :  { %698 = vmatprep.subr.bf16.mxu1 %v832_v0 }
 0x118   :  { %699 = vmatpush3.bf16.msra.mxu1 %v892_v5 }
 0x119   :  { %700 = vmatprep.subr.bf16.mxu1 %v832_v0 }
 0x11c   :  { %701 = vmatpush3.bf16.msra.mxu1 %v901_v6 }
 0x11d   :  { %702 = vmatprep.subr.bf16.mxu1 %v832_v0 }
 0x120   :  { %703 = vmatpush3.bf16.msra.mxu1 %v910_v7 }
 0x121   :  { %704 = vmatprep.subr.bf16.mxu1 %v832_v0 }
 0x124   :  { %705 = vmatpush3.bf16.msra.mxu1 %v919_v8 }
 0x125   :  { %730 = vmatprep.subr.bf16.mxu1 %v832_v0 }
 0x1da   :  { %v174_v25 = vpop.f32.mrb[0].mxu1 }
 0x1db   :  { %v181_v26 = vadd.f32 %v525_v23, %v174_v25  ;;  %v668_v27 = vpop.f32.mrb[1].mxu1 }
 0x1dc   :  { %v177_v28 = vpop.f32.mrb[2].mxu1 }
 0x1dd   :  { %v182_v29 = vadd.f32 %v526_v24, %v177_v28  ;;  %v669_v30 = vpop.f32.mrb[3].mxu1  ;;  %804 = vtanh.f32 %v181_v26 }
 0x1de   :  { %v557_v30 = vld [vmem:[%s1065_s0 + $0x38] sm:$0xff]  }
 0x1df   :  { %806 = vtanh.f32 %v182_v29 }
 0x1e7   :  { %v805_v31 = vpop.eup %804 }
 0x1e9   :  { %v807_v32 = vpop.eup %806 }
 0x1ea   :  { %v190_v33 = vpack.c.bf16 %v807_v32, %v805_v31  ;;  %v549_v31 = vunpack.c.l.bf16 %v557_v30  ;;  %v550_v32 = vunpack.c.h.bf16 %v557_v30 }
 0x1ec   :  { %687 = vmatmul.mubr.bf16.vlgmr.msra.gmra.mrb[4].mxu0 %v190_v33 }
 0x1ed   :  { %711 = vmatpush3.bf16.msra.mxu0 %v854_v1  ;;  %726 = vmatprep.mubr.msk.bf16.mxu0 %vm833_vm0, %v832_v0 }
 0x1ee   :  { %712 = vmatprep.subr.bf16.mxu0 %v832_v0 }
 0x1f1   :  { %713 = vmatpush3.bf16.msra.mxu0 %v865_v2 }
 0x1f2   :  { %714 = vmatprep.subr.bf16.mxu0 %v832_v0 }
 0x1f5   :  { %715 = vmatpush3.bf16.msra.mxu0 %v874_v3 }
 0x1f6   :  { %716 = vmatprep.subr.bf16.mxu0 %v832_v0 }
 0x1f9   :  { %717 = vmatpush3.bf16.msra.mxu0 %v883_v4 }
 0x1fa   :  { %718 = vmatprep.subr.bf16.mxu0 %v832_v0 }
 0x1fd   :  { %719 = vmatpush3.bf16.msra.mxu0 %v892_v5 }
 0x1fe   :  { %720 = vmatprep.subr.bf16.mxu0 %v832_v0 }
 0x201   :  { %721 = vmatpush3.bf16.msra.mxu0 %v901_v6 }
 0x202   :  { %722 = vmatprep.subr.bf16.mxu0 %v832_v0 }
 0x205   :  { %723 = vmatpush3.bf16.msra.mxu0 %v910_v7 }
 0x206   :  { %724 = vmatprep.subr.bf16.mxu0 %v832_v0 }
 0x209   :  { %725 = vmatpush3.bf16.msra.mxu0 %v919_v8 }
 0x20a   :  { %750 = vmatprep.subr.bf16.mxu0 %v832_v0 }
 0x2bf   :  { %v225_v37 = vpop.f32.mrb[4].mxu0 }
 0x2c0   :  { %v232_v38 = vadd.f32 %v529_v35, %v225_v37  ;;  %v688_v39 = vpop.f32.mrb[5].mxu0 }
 0x2c1   :  { %v228_v40 = vpop.f32.mrb[6].mxu0 }
 0x2c2   :  { %v233_v41 = vadd.f32 %v530_v36, %v228_v40  ;;  %v689_v42 = vpop.f32.mrb[7].mxu0  ;;  %808 = vtanh.f32 %v232_v38 }
 0x2c4   :  { %810 = vtanh.f32 %v233_v41 }
 0x2cc   :  { %v809_v43 = vpop.eup %808 }
 0x2ce   :  { %v811_v44 = vpop.eup %810 }
 0x2cf   :  { %v241_v45 = vpack.c.bf16 %v811_v44, %v809_v43 }
 0x2d1   :  { %707 = vmatmul.mubr.bf16.vlgmr.msra.gmra.mrb[4].mxu1 %v241_v45 }
 0x2d2   :  { %731 = vmatpush3.bf16.msra.mxu1 %v854_v1  ;;  %746 = vmatprep.mubr.msk.bf16.mxu1 %vm833_vm0, %v832_v0 }
 0x2d3   :  { %732 = vmatprep.subr.bf16.mxu1 %v832_v0 }
 0x2d6   :  { %733 = vmatpush3.bf16.msra.mxu1 %v865_v2 }
 0x2d7   :  { %734 = vmatprep.subr.bf16.mxu1 %v832_v0 }
 0x2da   :  { %735 = vmatpush3.bf16.msra.mxu1 %v874_v3 }
 0x2db   :  { %736 = vmatprep.subr.bf16.mxu1 %v832_v0 }
 0x2de   :  { %737 = vmatpush3.bf16.msra.mxu1 %v883_v4 }
 0x2df   :  { %738 = vmatprep.subr.bf16.mxu1 %v832_v0 }
 0x2e2   :  { %739 = vmatpush3.bf16.msra.mxu1 %v892_v5 }
 0x2e3   :  { %740 = vmatprep.subr.bf16.mxu1 %v832_v0 }
 0x2e6   :  { %741 = vmatpush3.bf16.msra.mxu1 %v901_v6 }
 0x2e7   :  { %742 = vmatprep.subr.bf16.mxu1 %v832_v0 }
 0x2ea   :  { %743 = vmatpush3.bf16.msra.mxu1 %v910_v7 }
 0x2eb   :  { %744 = vmatprep.subr.bf16.mxu1 %v832_v0 }
 0x2ee   :  { %745 = vmatpush3.bf16.msra.mxu1 %v919_v8 }
 0x2ef   :  { %770 = vmatprep.subr.bf16.mxu1 %v832_v0 }
 0x3a4   :  { %v276_v49 = vpop.f32.mrb[4].mxu1 }
 0x3a5   :  { %v283_v50 = vadd.f32 %v533_v47, %v276_v49  ;;  %v708_v51 = vpop.f32.mrb[5].mxu1 }
 0x3a6   :  { %v279_v52 = vpop.f32.mrb[6].mxu1 }
 0x3a7   :  { %v284_v53 = vadd.f32 %v534_v48, %v279_v52  ;;  %v709_v54 = vpop.f32.mrb[7].mxu1  ;;  %812 = vtanh.f32 %v283_v50 }
 0x3a9   :  { %814 = vtanh.f32 %v284_v53 }
 0x3b1   :  { %v813_v55 = vpop.eup %812 }
 0x3b3   :  { %v815_v56 = vpop.eup %814 }
 0x3b4   :  { %v292_v57 = vpack.c.bf16 %v815_v56, %v813_v55 }
 0x3b6   :  { %727 = vmatmul.mubr.bf16.vlgmr.msra.gmra.mrb[8].mxu0 %v292_v57 }
 0x3b7   :  { %751 = vmatpush3.bf16.msra.mxu0 %v854_v1  ;;  %766 = vmatprep.mubr.msk.bf16.mxu0 %vm833_vm0, %v832_v0 }
 0x3b8   :  { %752 = vmatprep.subr.bf16.mxu0 %v832_v0 }
 0x3bb   :  { %753 = vmatpush3.bf16.msra.mxu0 %v865_v2 }
 0x3bc   :  { %754 = vmatprep.subr.bf16.mxu0 %v832_v0 }
 0x3bf   :  { %755 = vmatpush3.bf16.msra.mxu0 %v874_v3 }
 0x3c0   :  { %756 = vmatprep.subr.bf16.mxu0 %v832_v0 }
 0x3c3   :  { %757 = vmatpush3.bf16.msra.mxu0 %v883_v4 }
 0x3c4   :  { %758 = vmatprep.subr.bf16.mxu0 %v832_v0 }
 0x3c7   :  { %759 = vmatpush3.bf16.msra.mxu0 %v892_v5 }
 0x3c8   :  { %760 = vmatprep.subr.bf16.mxu0 %v832_v0 }
 0x3cb   :  { %761 = vmatpush3.bf16.msra.mxu0 %v901_v6 }
 0x3cc   :  { %762 = vmatprep.subr.bf16.mxu0 %v832_v0 }
 0x3cf   :  { %763 = vmatpush3.bf16.msra.mxu0 %v910_v7 }
 0x3d0   :  { %764 = vmatprep.subr.bf16.mxu0 %v832_v0 }
 0x3d3   :  { %765 = vmatpush3.bf16.msra.mxu0 %v919_v8 }
 0x489   :  { %v327_v61 = vpop.f32.mrb[8].mxu0 }
 0x48a   :  { %v334_v62 = vadd.f32 %v537_v59, %v327_v61  ;;  %v728_v63 = vpop.f32.mrb[9].mxu0 }
 0x48b   :  { %v330_v9 = vpop.f32.mrb[10].mxu0 }
 0x48c   :  { %v335_v10 = vadd.f32 %v538_v60, %v330_v9  ;;  %v729_v11 = vpop.f32.mrb[11].mxu0  ;;  %816 = vtanh.f32 %v334_v62 }
 0x48e   :  { %818 = vtanh.f32 %v335_v10 }
 0x496   :  { %v817_v12 = vpop.eup %816 }
 0x498   :  { %v819_v13 = vpop.eup %818 }
 0x499   :  { %v343_v14 = vpack.c.bf16 %v819_v13, %v817_v12 }
 0x49b   :  { %747 = vmatmul.mubr.bf16.vlgmr.msra.gmra.mrb[8].mxu1 %v343_v14 }
 0x49c   :  { %771 = vmatpush3.bf16.msra.mxu1 %v854_v1  ;;  %786 = vmatprep.mubr.msk.bf16.mxu1 %vm833_vm0, %v832_v0  ;;  %v555_v1 = vld [vmem:[%s1065_s0 + $0x28] sm:$0xff]  }
 0x49d   :  { %772 = vmatprep.subr.bf16.mxu1 %v832_v0 }
 0x4a0   :  { %773 = vmatpush3.bf16.msra.mxu1 %v865_v2  ;;  %v541_v2 = vunpack.c.l.bf16 %v555_v1 }
 0x4a1   :  { %774 = vmatprep.subr.bf16.mxu1 %v832_v0 }
 0x4a4   :  { %775 = vmatpush3.bf16.msra.mxu1 %v874_v3  ;;  %v542_v3 = vunpack.c.h.bf16 %v555_v1 }
 0x4a5   :  { %776 = vmatprep.subr.bf16.mxu1 %v832_v0 }
 0x4a8   :  { %777 = vmatpush3.bf16.msra.mxu1 %v883_v4 }
 0x4a9   :  { %778 = vmatprep.subr.bf16.mxu1 %v832_v0 }
 0x4ac   :  { %779 = vmatpush3.bf16.msra.mxu1 %v892_v5 }
 0x4ad   :  { %780 = vmatprep.subr.bf16.mxu1 %v832_v0 }
 0x4b0   :  { %781 = vmatpush3.bf16.msra.mxu1 %v901_v6 }
 0x4b1   :  { %782 = vmatprep.subr.bf16.mxu1 %v832_v0 }
 0x4b4   :  { %783 = vmatpush3.bf16.msra.mxu1 %v910_v7 }
 0x4b5   :  { %784 = vmatprep.subr.bf16.mxu1 %v832_v0  ;;  %v556_v0 = vld [vmem:[%s1065_s0 + $0x30] sm:$0xff]  }
 0x4b6   :  { %v546_v20 = vunpack.c.h.bf16 %v556_v0 }
 0x4b8   :  { %785 = vmatpush3.bf16.msra.mxu1 %v919_v8  ;;  %v545_v8 = vunpack.c.l.bf16 %v556_v0 }
 0x56e   :  { %v378_v4 = vpop.f32.mrb[8].mxu1 }
 0x56f   :  { %v385_v5 = vadd.f32 %v541_v2, %v378_v4  ;;  %v748_v15 = vpop.f32.mrb[9].mxu1 }
 0x570   :  { %v381_v16 = vpop.f32.mrb[10].mxu1 }
 0x571   :  { %v386_v17 = vadd.f32 %v542_v3, %v381_v16  ;;  %v749_v6 = vpop.f32.mrb[11].mxu1  ;;  %820 = vtanh.f32 %v385_v5 }
 0x573   :  { %822 = vtanh.f32 %v386_v17 }
 0x57b   :  { %v821_v18 = vpop.eup %820 }
 0x57d   :  { %v823_v7 = vpop.eup %822 }
 0x57e   :  { %v394_v19 = vpack.c.bf16 %v823_v7, %v821_v18 }
 0x580   :  { %767 = vmatmul.mubr.bf16.vlgmr.msra.gmra.mrb[12].mxu0 %v394_v19 }
 0x653   :  { %v429_v21 = vpop.f32.mrb[12].mxu0 }
 0x654   :  { %v436_v22 = vadd.f32 %v545_v8, %v429_v21  ;;  %v768_v23 = vpop.f32.mrb[13].mxu0 }
 0x655   :  { %v432_v24 = vpop.f32.mrb[14].mxu0 }
 0x656   :  { %v437_v25 = vadd.f32 %v546_v20, %v432_v24  ;;  %v769_v26 = vpop.f32.mrb[15].mxu0  ;;  %824 = vtanh.f32 %v436_v22 }
 0x658   :  { %826 = vtanh.f32 %v437_v25 }
 0x660   :  { %v825_v27 = vpop.eup %824 }
 0x662   :  { %v827_v28 = vpop.eup %826 }
 0x663   :  { %v445_v29 = vpack.c.bf16 %v827_v28, %v825_v27 }
 0x665   :  { %787 = vmatmul.mubr.bf16.vlgmr.msra.gmra.mrb[12].mxu1 %v445_v29 }
 0x738   :  { %v480_v33 = vpop.f32.mrb[12].mxu1 }
 0x739   :  { %v487_v34 = vadd.f32 %v549_v31, %v480_v33  ;;  %v788_v35 = vpop.f32.mrb[13].mxu1 }
 0x73a   :  { %v483_v36 = vpop.f32.mrb[14].mxu1 }
 0x73b   :  { %828 = vtanh.f32 %v487_v34  ;;  %v488_v37 = vadd.f32 %v550_v32, %v483_v36  ;;  %v789_v38 = vpop.f32.mrb[15].mxu1 }
 0x73d   :  { %830 = vtanh.f32 %v488_v37 }
 0x745   :  { %v829_v39 = vpop.eup %828 }
 0x746   :  { %491 = vst [vmem:[%s1066_s2] sm:$0xff] %v829_v39 }
 0x747   :  { %v831_v40 = vpop.eup %830 }
 0x748   :  { %492 = vst [vmem:[%s1066_s2 + $0x8] sm:$0xff] %v831_v40 }

// kernel: pallas_rnn_forward.1
= control target key start
LH: loop header
LB: loop body
LE: loop exit
PB: predicated region body
PF: predicated region fallthrough
CT: control target
= control target key end

     0   :  { %v832_v0 = vmov 0.0   ;;  %vm833_vm0 = vmmov 0   ;;  %v834_v9 = vmov 0.0|0.0   ;;  %s1064_s1 = inlined_call_operand.vmem [shape: bf16[128,128], index: 1, kind: input, shape index: {}]   ;;  %s1065_s0 = inlined_call_operand.vmem [shape: bf16[8,16,128], index: 0, kind: input, shape index: {}]   ;;  %s1066_s2 = inlined_call_operand.vmem [shape: f32[16,128], index: 2, kind: output, shape index: {}]  }
   0x1   :  { %630 = vmatprep.subr.bf16.mxu0 %v832_v0  ;;  %v854_v1 = vld [vmem:[%s1064_s1] sm:$0xff]   ;;  %646 = vmatprep.mubr.msk.bf16.mxu0 %vm833_vm0, %v832_v0  ;;  %v865_v2 = vld [vmem:[%s1064_s1 + $0x8] sm:$0xff]   ;;  %v874_v3 = vld [vmem:[%s1064_s1 + $0x10] sm:$0xff]  }
   0x2   :  { %650 = vmatprep.subr.bf16.mxu1 %v832_v0  ;;  %666 = vmatprep.mubr.msk.bf16.mxu1 %vm833_vm0, %v832_v0  ;;  %v883_v4 = vld [vmem:[%s1064_s1 + $0x18] sm:$0xff]   ;;  %v892_v5 = vld [vmem:[%s1064_s1 + $0x20] sm:$0xff]   ;;  %v901_v6 = vld [vmem:[%s1064_s1 + $0x28] sm:$0xff]  }
   0x3   :  { %631 = vmatpush3.bf16.msra.mxu0 %v854_v1  ;;  %651 = vmatpush3.bf16.msra.mxu1 %v854_v1  ;;  %v910_v7 = vld [vmem:[%s1064_s1 + $0x30] sm:$0xff]   ;;  %v919_v8 = vld [vmem:[%s1064_s1 + $0x38] sm:$0xff]   ;;  %v520_v10 = vld [vmem:[%s1065_s0] sm:$0xff]  }
   0x4   :  { %632 = vmatprep.subr.bf16.mxu0 %v832_v0  ;;  %652 = vmatprep.subr.bf16.mxu1 %v832_v0  ;;  %v521_v11 = vunpack.c.l.bf16 %v520_v10  ;;  %v522_v12 = vunpack.c.h.bf16 %v520_v10  ;;  %v551_v22 = vld [vmem:[%s1065_s0 + $0x8] sm:$0xff]   ;;  %v552_v34 = vld [vmem:[%s1065_s0 + $0x10] sm:$0xff]   ;;  %v553_v46 = vld [vmem:[%s1065_s0 + $0x18] sm:$0xff]  }
   0x5   :  { %v525_v23 = vunpack.c.l.bf16 %v551_v22  ;;  %v526_v24 = vunpack.c.h.bf16 %v551_v22  ;;  %v529_v35 = vunpack.c.l.bf16 %v552_v34  ;;  %v530_v36 = vunpack.c.h.bf16 %v552_v34  ;;  %v554_v58 = vld [vmem:[%s1065_s0 + $0x20] sm:$0xff]  }
   0x6   :  { %v533_v47 = vunpack.c.l.bf16 %v553_v46  ;;  %v534_v48 = vunpack.c.h.bf16 %v553_v46  ;;  %v537_v59 = vunpack.c.l.bf16 %v554_v58  ;;  %v538_v60 = vunpack.c.h.bf16 %v554_v58 }
   0x7   :  { %633 = vmatpush3.bf16.msra.mxu0 %v865_v2  ;;  %653 = vmatpush3.bf16.msra.mxu1 %v865_v2 }
   0x8   :  { %634 = vmatprep.subr.bf16.mxu0 %v832_v0  ;;  %654 = vmatprep.subr.bf16.mxu1 %v832_v0 }
   0xb   :  { %635 = vmatpush3.bf16.msra.mxu0 %v874_v3  ;;  %655 = vmatpush3.bf16.msra.mxu1 %v874_v3 }
   0xc   :  { %636 = vmatprep.subr.bf16.mxu0 %v832_v0  ;;  %656 = vmatprep.subr.bf16.mxu1 %v832_v0 }
   0xf   :  { %637 = vmatpush3.bf16.msra.mxu0 %v883_v4  ;;  %657 = vmatpush3.bf16.msra.mxu1 %v883_v4 }
  0x10   :  { %638 = vmatprep.subr.bf16.mxu0 %v832_v0  ;;  %658 = vmatprep.subr.bf16.mxu1 %v832_v0 }
  0x13   :  { %639 = vmatpush3.bf16.msra.mxu0 %v892_v5  ;;  %659 = vmatpush3.bf16.msra.mxu1 %v892_v5 }
  0x14   :  { %640 = vmatprep.subr.bf16.mxu0 %v832_v0  ;;  %660 = vmatprep.subr.bf16.mxu1 %v832_v0 }
  0x17   :  { %641 = vmatpush3.bf16.msra.mxu0 %v901_v6  ;;  %661 = vmatpush3.bf16.msra.mxu1 %v901_v6 }
  0x18   :  { %642 = vmatprep.subr.bf16.mxu0 %v832_v0  ;;  %662 = vmatprep.subr.bf16.mxu1 %v832_v0 }
  0x1b   :  { %643 = vmatpush3.bf16.msra.mxu0 %v910_v7  ;;  %663 = vmatpush3.bf16.msra.mxu1 %v910_v7 }
  0x1c   :  { %644 = vmatprep.subr.bf16.mxu0 %v832_v0  ;;  %664 = vmatprep.subr.bf16.mxu1 %v832_v0 }
  0x1f   :  { %645 = vmatpush3.bf16.msra.mxu0 %v919_v8  ;;  %665 = vmatpush3.bf16.msra.mxu1 %v919_v8 }
  0x20   :  { %670 = vmatprep.subr.bf16.mxu0 %v832_v0  ;;  %690 = vmatprep.subr.bf16.mxu1 %v832_v0 }
  0x22   :  { %647 = vmatmul.mubr.bf16.vlgmr.msra.gmra.mrb[0].mxu0 %v834_v9 }
  0x23   :  { %671 = vmatpush3.bf16.msra.mxu0 %v854_v1  ;;  %686 = vmatprep.mubr.msk.bf16.mxu0 %vm833_vm0, %v832_v0 }
  0x24   :  { %672 = vmatprep.subr.bf16.mxu0 %v832_v0 }
  0x27   :  { %673 = vmatpush3.bf16.msra.mxu0 %v865_v2 }
  0x28   :  { %674 = vmatprep.subr.bf16.mxu0 %v832_v0 }
  0x2b   :  { %675 = vmatpush3.bf16.msra.mxu0 %v874_v3 }
  0x2c   :  { %676 = vmatprep.subr.bf16.mxu0 %v832_v0 }
  0x2f   :  { %677 = vmatpush3.bf16.msra.mxu0 %v883_v4 }
  0x30   :  { %678 = vmatprep.subr.bf16.mxu0 %v832_v0 }
  0x33   :  { %679 = vmatpush3.bf16.msra.mxu0 %v892_v5 }
  0x34   :  { %680 = vmatprep.subr.bf16.mxu0 %v832_v0 }
  0x37   :  { %681 = vmatpush3.bf16.msra.mxu0 %v901_v6 }
  0x38   :  { %682 = vmatprep.subr.bf16.mxu0 %v832_v0 }
  0x3b   :  { %683 = vmatpush3.bf16.msra.mxu0 %v910_v7 }
  0x3c   :  { %684 = vmatprep.subr.bf16.mxu0 %v832_v0 }
  0x3f   :  { %685 = vmatpush3.bf16.msra.mxu0 %v919_v8 }
  0x40   :  { %710 = vmatprep.subr.bf16.mxu0 %v832_v0 }
  0xf5   :  { %v123_v13 = vpop.f32.mrb[0].mxu0 }
  0xf6   :  { %v130_v14 = vadd.f32 %v521_v11, %v123_v13  ;;  %v648_v15 = vpop.f32.mrb[1].mxu0 }
  0xf7   :  { %v126_v16 = vpop.f32.mrb[2].mxu0 }
  0xf8   :  { %v131_v17 = vadd.f32 %v522_v12, %v126_v16  ;;  %v649_v18 = vpop.f32.mrb[3].mxu0  ;;  %800 = vtanh.f32 %v130_v14 }
  0xfa   :  { %802 = vtanh.f32 %v131_v17 }
 0x102   :  { %v801_v19 = vpop.eup %800 }
 0x104   :  { %v803_v20 = vpop.eup %802 }
 0x105   :  { %v139_v21 = vpack.c.bf16 %v803_v20, %v801_v19 }
 0x107   :  { %667 = vmatmul.mubr.bf16.vlgmr.msra.gmra.mrb[0].mxu1 %v139_v21 }
 0x108   :  { %691 = vmatpush3.bf16.msra.mxu1 %v854_v1  ;;  %706 = vmatprep.mubr.msk.bf16.mxu1 %vm833_vm0, %v832_v0 }
 0x109   :  { %692 = vmatprep.subr.bf16.mxu1 %v832_v0 }
 0x10c   :  { %693 = vmatpush3.bf16.msra.mxu1 %v865_v2 }
 0x10d   :  { %694 = vmatprep.subr.bf16.mxu1 %v832_v0 }
 0x110   :  { %695 = vmatpush3.bf16.msra.mxu1 %v874_v3 }
 0x111   :  { %696 = vmatprep.subr.bf16.mxu1 %v832_v0 }
 0x114   :  { %697 = vmatpush3.bf16.msra.mxu1 %v883_v4 }
 0x115   :  { %698 = vmatprep.subr.bf16.mxu1 %v832_v0 }
 0x118   :  { %699 = vmatpush3.bf16.msra.mxu1 %v892_v5 }
 0x119   :  { %700 = vmatprep.subr.bf16.mxu1 %v832_v0 }
 0x11c   :  { %701 = vmatpush3.bf16.msra.mxu1 %v901_v6 }
 0x11d   :  { %702 = vmatprep.subr.bf16.mxu1 %v832_v0 }
 0x120   :  { %703 = vmatpush3.bf16.msra.mxu1 %v910_v7 }
 0x121   :  { %704 = vmatprep.subr.bf16.mxu1 %v832_v0 }
 0x124   :  { %705 = vmatpush3.bf16.msra.mxu1 %v919_v8 }
 0x125   :  { %730 = vmatprep.subr.bf16.mxu1 %v832_v0 }
 0x1da   :  { %v174_v25 = vpop.f32.mrb[0].mxu1 }
 0x1db   :  { %v181_v26 = vadd.f32 %v525_v23, %v174_v25  ;;  %v668_v27 = vpop.f32.mrb[1].mxu1 }
 0x1dc   :  { %v177_v28 = vpop.f32.mrb[2].mxu1 }
 0x1dd   :  { %v182_v29 = vadd.f32 %v526_v24, %v177_v28  ;;  %v669_v30 = vpop.f32.mrb[3].mxu1  ;;  %804 = vtanh.f32 %v181_v26 }
 0x1de   :  { %v557_v30 = vld [vmem:[%s1065_s0 + $0x38] sm:$0xff]  }
 0x1df   :  { %806 = vtanh.f32 %v182_v29 }
 0x1e7   :  { %v805_v31 = vpop.eup %804 }
 0x1e9   :  { %v807_v32 = vpop.eup %806 }
 0x1ea   :  { %v190_v33 = vpack.c.bf16 %v807_v32, %v805_v31  ;;  %v549_v31 = vunpack.c.l.bf16 %v557_v30  ;;  %v550_v32 = vunpack.c.h.bf16 %v557_v30 }
 0x1ec   :  { %687 = vmatmul.mubr.bf16.vlgmr.msra.gmra.mrb[4].mxu0 %v190_v33 }
 0x1ed   :  { %711 = vmatpush3.bf16.msra.mxu0 %v854_v1  ;;  %726 = vmatprep.mubr.msk.bf16.mxu0 %vm833_vm0, %v832_v0 }
 0x1ee   :  { %712 = vmatprep.subr.bf16.mxu0 %v832_v0 }
 0x1f1   :  { %713 = vmatpush3.bf16.msra.mxu0 %v865_v2 }
 0x1f2   :  { %714 = vmatprep.subr.bf16.mxu0 %v832_v0 }
 0x1f5   :  { %715 = vmatpush3.bf16.msra.mxu0 %v874_v3 }
 0x1f6   :  { %716 = vmatprep.subr.bf16.mxu0 %v832_v0 }
 0x1f9   :  { %717 = vmatpush3.bf16.msra.mxu0 %v883_v4 }
 0x1fa   :  { %718 = vmatprep.subr.bf16.mxu0 %v832_v0 }
 0x1fd   :  { %719 = vmatpush3.bf16.msra.mxu0 %v892_v5 }
 0x1fe   :  { %720 = vmatprep.subr.bf16.mxu0 %v832_v0 }
 0x201   :  { %721 = vmatpush3.bf16.msra.mxu0 %v901_v6 }
 0x202   :  { %722 = vmatprep.subr.bf16.mxu0 %v832_v0 }
 0x205   :  { %723 = vmatpush3.bf16.msra.mxu0 %v910_v7 }
 0x206   :  { %724 = vmatprep.subr.bf16.mxu0 %v832_v0 }
 0x209   :  { %725 = vmatpush3.bf16.msra.mxu0 %v919_v8 }
 0x20a   :  { %750 = vmatprep.subr.bf16.mxu0 %v832_v0 }
 0x2bf   :  { %v225_v37 = vpop.f32.mrb[4].mxu0 }
 0x2c0   :  { %v232_v38 = vadd.f32 %v529_v35, %v225_v37  ;;  %v688_v39 = vpop.f32.mrb[5].mxu0 }
 0x2c1   :  { %v228_v40 = vpop.f32.mrb[6].mxu0 }
 0x2c2   :  { %v233_v41 = vadd.f32 %v530_v36, %v228_v40  ;;  %v689_v42 = vpop.f32.mrb[7].mxu0  ;;  %808 = vtanh.f32 %v232_v38 }
 0x2c4   :  { %810 = vtanh.f32 %v233_v41 }
 0x2cc   :  { %v809_v43 = vpop.eup %808 }
 0x2ce   :  { %v811_v44 = vpop.eup %810 }
 0x2cf   :  { %v241_v45 = vpack.c.bf16 %v811_v44, %v809_v43 }
 0x2d1   :  { %707 = vmatmul.mubr.bf16.vlgmr.msra.gmra.mrb[4].mxu1 %v241_v45 }
 0x2d2   :  { %731 = vmatpush3.bf16.msra.mxu1 %v854_v1  ;;  %746 = vmatprep.mubr.msk.bf16.mxu1 %vm833_vm0, %v832_v0 }
 0x2d3   :  { %732 = vmatprep.subr.bf16.mxu1 %v832_v0 }
 0x2d6   :  { %733 = vmatpush3.bf16.msra.mxu1 %v865_v2 }
 0x2d7   :  { %734 = vmatprep.subr.bf16.mxu1 %v832_v0 }
 0x2da   :  { %735 = vmatpush3.bf16.msra.mxu1 %v874_v3 }
 0x2db   :  { %736 = vmatprep.subr.bf16.mxu1 %v832_v0 }
 0x2de   :  { %737 = vmatpush3.bf16.msra.mxu1 %v883_v4 }
 0x2df   :  { %738 = vmatprep.subr.bf16.mxu1 %v832_v0 }
 0x2e2   :  { %739 = vmatpush3.bf16.msra.mxu1 %v892_v5 }
 0x2e3   :  { %740 = vmatprep.subr.bf16.mxu1 %v832_v0 }
 0x2e6   :  { %741 = vmatpush3.bf16.msra.mxu1 %v901_v6 }
 0x2e7   :  { %742 = vmatprep.subr.bf16.mxu1 %v832_v0 }
 0x2ea   :  { %743 = vmatpush3.bf16.msra.mxu1 %v910_v7 }
 0x2eb   :  { %744 = vmatprep.subr.bf16.mxu1 %v832_v0 }
 0x2ee   :  { %745 = vmatpush3.bf16.msra.mxu1 %v919_v8 }
 0x2ef   :  { %770 = vmatprep.subr.bf16.mxu1 %v832_v0 }
 0x3a4   :  { %v276_v49 = vpop.f32.mrb[4].mxu1 }
 0x3a5   :  { %v283_v50 = vadd.f32 %v533_v47, %v276_v49  ;;  %v708_v51 = vpop.f32.mrb[5].mxu1 }
 0x3a6   :  { %v279_v52 = vpop.f32.mrb[6].mxu1 }
 0x3a7   :  { %v284_v53 = vadd.f32 %v534_v48, %v279_v52  ;;  %v709_v54 = vpop.f32.mrb[7].mxu1  ;;  %812 = vtanh.f32 %v283_v50 }
 0x3a9   :  { %814 = vtanh.f32 %v284_v53 }
 0x3b1   :  { %v813_v55 = vpop.eup %812 }
 0x3b3   :  { %v815_v56 = vpop.eup %814 }
 0x3b4   :  { %v292_v57 = vpack.c.bf16 %v815_v56, %v813_v55 }
 0x3b6   :  { %727 = vmatmul.mubr.bf16.vlgmr.msra.gmra.mrb[8].mxu0 %v292_v57 }
 0x3b7   :  { %751 = vmatpush3.bf16.msra.mxu0 %v854_v1  ;;  %766 = vmatprep.mubr.msk.bf16.mxu0 %vm833_vm0, %v832_v0 }
 0x3b8   :  { %752 = vmatprep.subr.bf16.mxu0 %v832_v0 }
 0x3bb   :  { %753 = vmatpush3.bf16.msra.mxu0 %v865_v2 }
 0x3bc   :  { %754 = vmatprep.subr.bf16.mxu0 %v832_v0 }
 0x3bf   :  { %755 = vmatpush3.bf16.msra.mxu0 %v874_v3 }
 0x3c0   :  { %756 = vmatprep.subr.bf16.mxu0 %v832_v0 }
 0x3c3   :  { %757 = vmatpush3.bf16.msra.mxu0 %v883_v4 }
 0x3c4   :  { %758 = vmatprep.subr.bf16.mxu0 %v832_v0 }
 0x3c7   :  { %759 = vmatpush3.bf16.msra.mxu0 %v892_v5 }
 0x3c8   :  { %760 = vmatprep.subr.bf16.mxu0 %v832_v0 }
 0x3cb   :  { %761 = vmatpush3.bf16.msra.mxu0 %v901_v6 }
 0x3cc   :  { %762 = vmatprep.subr.bf16.mxu0 %v832_v0 }
 0x3cf   :  { %763 = vmatpush3.bf16.msra.mxu0 %v910_v7 }
 0x3d0   :  { %764 = vmatprep.subr.bf16.mxu0 %v832_v0 }
 0x3d3   :  { %765 = vmatpush3.bf16.msra.mxu0 %v919_v8 }
 0x489   :  { %v327_v61 = vpop.f32.mrb[8].mxu0 }
 0x48a   :  { %v334_v62 = vadd.f32 %v537_v59, %v327_v61  ;;  %v728_v63 = vpop.f32.mrb[9].mxu0 }
 0x48b   :  { %v330_v9 = vpop.f32.mrb[10].mxu0 }
 0x48c   :  { %v335_v10 = vadd.f32 %v538_v60, %v330_v9  ;;  %v729_v11 = vpop.f32.mrb[11].mxu0  ;;  %816 = vtanh.f32 %v334_v62 }
 0x48e   :  { %818 = vtanh.f32 %v335_v10 }
 0x496   :  { %v817_v12 = vpop.eup %816 }
 0x498   :  { %v819_v13 = vpop.eup %818 }
 0x499   :  { %v343_v14 = vpack.c.bf16 %v819_v13, %v817_v12 }
 0x49b   :  { %747 = vmatmul.mubr.bf16.vlgmr.msra.gmra.mrb[8].mxu1 %v343_v14 }
 0x49c   :  { %771 = vmatpush3.bf16.msra.mxu1 %v854_v1  ;;  %786 = vmatprep.mubr.msk.bf16.mxu1 %vm833_vm0, %v832_v0  ;;  %v555_v1 = vld [vmem:[%s1065_s0 + $0x28] sm:$0xff]  }
 0x49d   :  { %772 = vmatprep.subr.bf16.mxu1 %v832_v0 }
 0x4a0   :  { %773 = vmatpush3.bf16.msra.mxu1 %v865_v2  ;;  %v541_v2 = vunpack.c.l.bf16 %v555_v1 }
 0x4a1   :  { %774 = vmatprep.subr.bf16.mxu1 %v832_v0 }
 0x4a4   :  { %775 = vmatpush3.bf16.msra.mxu1 %v874_v3  ;;  %v542_v3 = vunpack.c.h.bf16 %v555_v1 }
 0x4a5   :  { %776 = vmatprep.subr.bf16.mxu1 %v832_v0 }
 0x4a8   :  { %777 = vmatpush3.bf16.msra.mxu1 %v883_v4 }
 0x4a9   :  { %778 = vmatprep.subr.bf16.mxu1 %v832_v0 }
 0x4ac   :  { %779 = vmatpush3.bf16.msra.mxu1 %v892_v5 }
 0x4ad   :  { %780 = vmatprep.subr.bf16.mxu1 %v832_v0 }
 0x4b0   :  { %781 = vmatpush3.bf16.msra.mxu1 %v901_v6 }
 0x4b1   :  { %782 = vmatprep.subr.bf16.mxu1 %v832_v0 }
 0x4b4   :  { %783 = vmatpush3.bf16.msra.mxu1 %v910_v7 }
 0x4b5   :  { %784 = vmatprep.subr.bf16.mxu1 %v832_v0  ;;  %v556_v0 = vld [vmem:[%s1065_s0 + $0x30] sm:$0xff]  }
 0x4b6   :  { %v546_v20 = vunpack.c.h.bf16 %v556_v0 }
 0x4b8   :  { %785 = vmatpush3.bf16.msra.mxu1 %v919_v8  ;;  %v545_v8 = vunpack.c.l.bf16 %v556_v0 }
 0x56e   :  { %v378_v4 = vpop.f32.mrb[8].mxu1 }
 0x56f   :  { %v385_v5 = vadd.f32 %v541_v2, %v378_v4  ;;  %v748_v15 = vpop.f32.mrb[9].mxu1 }
 0x570   :  { %v381_v16 = vpop.f32.mrb[10].mxu1 }
 0x571   :  { %v386_v17 = vadd.f32 %v542_v3, %v381_v16  ;;  %v749_v6 = vpop.f32.mrb[11].mxu1  ;;  %820 = vtanh.f32 %v385_v5 }
 0x573   :  { %822 = vtanh.f32 %v386_v17 }
 0x57b   :  { %v821_v18 = vpop.eup %820 }
 0x57d   :  { %v823_v7 = vpop.eup %822 }
 0x57e   :  { %v394_v19 = vpack.c.bf16 %v823_v7, %v821_v18 }
 0x580   :  { %767 = vmatmul.mubr.bf16.vlgmr.msra.gmra.mrb[12].mxu0 %v394_v19 }
 0x653   :  { %v429_v21 = vpop.f32.mrb[12].mxu0 }
 0x654   :  { %v436_v22 = vadd.f32 %v545_v8, %v429_v21  ;;  %v768_v23 = vpop.f32.mrb[13].mxu0 }
 0x655   :  { %v432_v24 = vpop.f32.mrb[14].mxu0 }
 0x656   :  { %v437_v25 = vadd.f32 %v546_v20, %v432_v24  ;;  %v769_v26 = vpop.f32.mrb[15].mxu0  ;;  %824 = vtanh.f32 %v436_v22 }
 0x658   :  { %826 = vtanh.f32 %v437_v25 }
 0x660   :  { %v825_v27 = vpop.eup %824 }
 0x662   :  { %v827_v28 = vpop.eup %826 }
 0x663   :  { %v445_v29 = vpack.c.bf16 %v827_v28, %v825_v27 }
 0x665   :  { %787 = vmatmul.mubr.bf16.vlgmr.msra.gmra.mrb[12].mxu1 %v445_v29 }
 0x738   :  { %v480_v33 = vpop.f32.mrb[12].mxu1 }
 0x739   :  { %v487_v34 = vadd.f32 %v549_v31, %v480_v33  ;;  %v788_v35 = vpop.f32.mrb[13].mxu1 }
 0x73a   :  { %v483_v36 = vpop.f32.mrb[14].mxu1 }
 0x73b   :  { %828 = vtanh.f32 %v487_v34  ;;  %v488_v37 = vadd.f32 %v550_v32, %v483_v36  ;;  %v789_v38 = vpop.f32.mrb[15].mxu1 }
 0x73d   :  { %830 = vtanh.f32 %v488_v37 }
 0x745   :  { %v829_v39 = vpop.eup %828 }
 0x746   :  { %491 = vst [vmem:[%s1066_s2] sm:$0xff] %v829_v39 }
 0x747   :  { %v831_v40 = vpop.eup %830 }
 0x748   :  { %492 = vst [vmem:[%s1066_s2 + $0x8] sm:$0xff] %v831_v40 }

</bundles_post_ra>
